<compile_context>
chip_gen: v5e
topology: v5e:2x2
jax: 0.10.0
libtpu: 0.0.40
codegen_flags: <defaults>
</compile_context>

<pallas_src>
import jax
import jax.numpy as jnp
from jax.experimental import pallas as pl
from jax.experimental.pallas import tpu as pltpu

EPS = 1e-5


# --------------------------- hardware-aware config ----------------------------

def _hw_config():
    """Per-generation VMEM budget / per-buffer tile target / TensorCore count."""
    kind = ""
    try:
        kind = jax.devices()[0].device_kind.lower()
    except Exception:
        pass
    if "v7" in kind:                        # 64 MiB physical VMEM, 2 TCs
        return {"vmem_limit": 48 << 20, "tile_target": 4 << 20, "num_tc": 2}
    if "v4" in kind or "v5p" in kind:       # 128 MiB physical VMEM, megacore
        return {"vmem_limit": 96 << 20, "tile_target": 8 << 20, "num_tc": 2}
    if "v5" in kind or "v6" in kind:        # v5e / v6e: 128 MiB, single TC
        return {"vmem_limit": 96 << 20, "tile_target": 8 << 20, "num_tc": 1}
    if "v2" in kind or "v3" in kind:        # small-VMEM generations
        return {"vmem_limit": 14 << 20, "tile_target": 1 << 20, "num_tc": 1}
    return {"vmem_limit": 32 << 20, "tile_target": 2 << 20, "num_tc": 1}


def _fold_layout(T, C):
    """Lane-dense view: (T, C) -> (T//g, g*C) with g*C == 128 when possible."""
    if C < 128 and 128 % C == 0:
        g = 128 // C
        if T % g == 0:
            return T // g, C * g, g
    return T, C, 1


def _padded_row_bytes(Tk, L):
    """f32 VMEM footprint of one batch row after (8,128) tile padding."""
    return (-(-Tk // 8) * 8) * (-(-L // 128) * 128) * 4


def _rows_per_block(B, row_bytes, hw):
    """Largest divisor of B whose block fits the per-buffer tile target.
    Divisor => no batch padding and no output slicing (no extra HBM passes).
    On multi-TensorCore chips keep the parallel batch grid >= num_tc steps."""
    cap = max(1, hw["tile_target"] // max(1, row_bytes))
    if hw["num_tc"] > 1 and B >= hw["num_tc"]:
        cap = min(cap, B // hw["num_tc"])
    cap = max(1, min(cap, B))
    for d in range(cap, 0, -1):
        if B % d == 0:
            return d
    return 1


def _compiler_params(hw):
    return pltpu.CompilerParams(
        dimension_semantics=("parallel",),
        vmem_limit_bytes=hw["vmem_limit"],
    )


# ------------------------------- lane fold ------------------------------------

def _lane_fold(v, groups, C):
    """v: (bb, L) partial sums in the replicated-lane layout, L = groups*C.
    Returns per-channel totals replicated across the `groups` lane copies.
    log2(groups) roll-and-add steps (XLU) on tiny (bb, L) arrays; groups is a
    power of two because C divides 128."""
    if groups == 1:
        return v
    L = groups * C
    out = v
    shift = C
    while shift < L:
        out = out + pltpu.roll(out, shift, 1)
        shift *= 2
    return out


# -------------------------------- kernels --------------------------------------

def _make_norm_kernel(C, groups):
    def kernel(x_ref, wb_ref, y_ref, stats_ref):
        x = x_ref[...].astype(jnp.float32)                  # (bb, Tk, L)
        inv_n = 1.0 / (x.shape[1] * groups)                 # 1 / T
        wb = wb_ref[...].astype(jnp.float32)                # (2, L): [w_rep, b_rep]
        w = wb[0][None, None, :]
        b = wb[1][None, None, :]
        # two-pass statistics (numerically safe vs E[x^2]-E[x]^2)
        mean = (_lane_fold(jnp.sum(x, axis=1), groups, C) * inv_n)[:, None, :]
        d = x - mean
        var = _lane_fold(jnp.sum(d * d, axis=1), groups, C) * inv_n    # (bb, L)
        std = jnp.sqrt(var + EPS)
        scale = jax.lax.rsqrt(var + EPS)[:, None, :] * w    # EUP rsqrt, no divide
        y_ref[...] = (d * scale + b).astype(y_ref.dtype)
        # slice stores (no sublane concatenate); lanes [:C] hold each channel once
        stats_ref[:, 0:1, :] = mean[:, :, :C]
        stats_ref[:, 1:2, :] = std[:, None, :C]
    return kernel


def _make_norm_masked_kernel(C, groups):
    def kernel(x_ref, m_ref, wb_ref, y_ref, stats_ref):
        x = x_ref[...].astype(jnp.float32)                  # (bb, Tk, L)
        m = m_ref[...].astype(jnp.float32)                  # mask in native dtype
        wb = wb_ref[...].astype(jnp.float32)
        w = wb[0][None, None, :]
        b = wb[1][None, None, :]
        # spec (PyTorch RevON): mean = UNMASKED sum of x / masked count
        vsum = _lane_fold(jnp.sum(x, axis=1), groups, C)
        vcnt = _lane_fold(jnp.sum(m, axis=1), groups, C)
        rc = 1.0 / (vcnt + EPS)                             # tiny (bb, L) divide
        mean = (vsum * rc)[:, None, :]
        d = x - mean
        var = _lane_fold(jnp.sum(d * d * m, axis=1), groups, C) * rc
        std = jnp.sqrt(var + EPS)
        scale = jax.lax.rsqrt(var + EPS)[:, None, :] * w
        y_ref[...] = ((d * scale + b) * m).astype(y_ref.dtype)
        stats_ref[:, 0:1, :] = mean[:, :, :C]
        stats_ref[:, 1:2, :] = std[:, None, :C]
    return kernel


def _norm_fore_kernel(x_ref, wb_ref, stats_ref, y_ref):
    x = x_ref[...].astype(jnp.float32)                      # (bb, Tk, L)
    st = stats_ref[...].astype(jnp.float32)                 # (bb, 2, L) replicated
    mean, std = st[:, 0:1, :], st[:, 1:2, :]
    wb = wb_ref[...].astype(jnp.float32)
    w = wb[0][None, None, :]
    b = wb[1][None, None, :]
    scale = w * pl.reciprocal(std, approx=False)            # per-channel only
    shift = b - mean * scale
    y_ref[...] = (x * scale + shift).astype(y_ref.dtype)


def _denorm_kernel(x_ref, dp_ref, stats_ref, y_ref):
    # dp row0 = affine_bias, row1 = 1 / (affine_weight + eps^2)  (precomputed)
    x = x_ref[...].astype(jnp.float32)
    st = stats_ref[...].astype(jnp.float32)
    mean, std = st[:, 0:1, :], st[:, 1:2, :]
    dp = dp_ref[...].astype(jnp.float32)
    b = dp[0][None, None, :]
    inv_w = dp[1][None, None, :]
    scale = inv_w * std
    shift = mean - b * scale
    y_ref[...] = (x * scale + shift).astype(y_ref.dtype)


# -------------------------------- wrapper ---------------------------------------

class RevONPallas:
    """Pallas re-implementation of RevON (affine=True, subtract_last=False)."""

    def __init__(self, num_features: int):
        self.num_features = num_features
        # deterministic init matching nn.Parameter(torch.ones / torch.zeros)
        self.affine_weight = jnp.ones((num_features,), jnp.float32)
        self.affine_bias = jnp.zeros((num_features,), jnp.float32)
        self._hw = _hw_config()
        # packed stats (B, 2, C): row 0 = mean, row 1 = stdev
        # TODO(synk): Python-object statistics state; not jit/vmap friendly.
        self._stats = None

    @property
    def mean(self):
        return None if self._stats is None else self._stats[:, 0:1, :]

    @property
    def stdev(self):
        return None if self._stats is None else self._stats[:, 1:2, :]

    def __call__(self, x, mode: str, mask=None):
        if mode == "norm":
            return self._norm(x, mask)
        if mode == "norm-fore":
            wb = jnp.stack([self.affine_weight, self.affine_bias], axis=0)
            return self._apply(x, _norm_fore_kernel, wb)
        if mode == "denorm":
            dp = jnp.stack(
                [self.affine_bias, 1.0 / (self.affine_weight + EPS * EPS)], axis=0)
            return self._apply(x, _denorm_kernel, dp)
        raise NotImplementedError(mode)

    # ---- norm: compute statistics + normalize (single fused pass) ----
    def _norm(self, x, mask=None):
        B, T, C = x.shape
        Tk, L, g = _fold_layout(T, C)
        xv = x.reshape(B, Tk, L)                      # free contiguous reshape
        bb = _rows_per_block(B, _padded_row_bytes(Tk, L), self._hw)
        grid = (B // bb,)

        x_spec = pl.BlockSpec((bb, Tk, L), lambda i: (i, 0, 0))
        wb_spec = pl.BlockSpec((2, L), lambda i: (0, 0))
        st_spec = pl.BlockSpec((bb, 2, C), lambda i: (i, 0, 0))
        out_shape = (jax.ShapeDtypeStruct((B, Tk, L), x.dtype),
                     jax.ShapeDtypeStruct((B, 2, C), jnp.float32))
        wb = jnp.stack([jnp.tile(self.affine_weight, g),
                        jnp.tile(self.affine_bias, g)], axis=0)      # (2, L)

        if mask is None:
            y, stats = pl.pallas_call(
                _make_norm_kernel(C, g),
                out_shape=out_shape,
                grid=grid,
                in_specs=[x_spec, wb_spec],
                out_specs=(x_spec, st_spec),
                compiler_params=_compiler_params(self._hw),
            )(xv, wb)
        else:
            mv = mask.reshape(B, Tk, L)               # native dtype, no extra pass
            y, stats = pl.pallas_call(
                _make_norm_masked_kernel(C, g),
                out_shape=out_shape,
                grid=grid,
                in_specs=[x_spec, x_spec, wb_spec],
                out_specs=(x_spec, st_spec),
                compiler_params=_compiler_params(self._hw),
            )(xv, mv, wb)

        self._stats = stats
        return y.reshape(B, T, C)

    # ---- norm-fore / denorm: elementwise re-use of stored statistics ----
    def _apply(self, x, kernel, packed_params):
        if self._stats is None:
            raise ValueError("call mode='norm' before norm-fore / denorm")
        B, T, C = x.shape
        Tk, L, g = _fold_layout(T, C)
        xv = x.reshape(B, Tk, L)
        stats = self._stats if g == 1 else jnp.tile(self._stats, (1, 1, g))
        params = packed_params if g == 1 else jnp.tile(packed_params, (1, g))
        bb = _rows_per_block(B, _padded_row_bytes(Tk, L), self._hw)
        grid = (B // bb,)

        x_spec = pl.BlockSpec((bb, Tk, L), lambda i: (i, 0, 0))
        p_spec = pl.BlockSpec((2, L), lambda i: (0, 0))
        st_spec = pl.BlockSpec((bb, 2, L), lambda i: (i, 0, 0))

        y = pl.pallas_call(
            kernel,
            out_shape=jax.ShapeDtypeStruct((B, Tk, L), x.dtype),
            grid=grid,
            in_specs=[x_spec, p_spec, st_spec],
            out_specs=x_spec,
            compiler_params=_compiler_params(self._hw),
        )(xv, params, stats)
        return y.reshape(B, T, C)


# ------------------------- reference (plain JAX) --------------------------------

def _ref_norm(x, w, b):
    mean = jnp.mean(x, axis=1, keepdims=True)
    var = jnp.mean((x - mean) ** 2, axis=1, keepdims=True)
    std = jnp.sqrt(var + EPS)
    return (x - mean) / std * w + b, mean, std


def _ref_norm_masked(x, mask, w, b):
    vsum = jnp.sum(x, axis=1, keepdims=True)
    vcnt = jnp.sum(mask, axis=1, keepdims=True)
    mean = vsum / (vcnt + EPS)
    var = jnp.sum((x - mean) ** 2 * mask, axis=1, keepdims=True) / (vcnt + EPS)
    std = jnp.sqrt(var + EPS)
    return ((x - mean) / std * w + b) * mask, mean, std


def _ref_denorm(y, w, b, mean, std):
    return (y - b) / (w + EPS * EPS) * std + mean


# ------------------------------------ main --------------------------------------

if __name__ == "__main__":
    B, T, C = 2, 8, 32
    key = jax.random.PRNGKey(0)
    kx, km = jax.random.split(key)
    x = jax.random.normal(kx, (B, T, C), jnp.float32) * 3.0 + 1.5
    mask = (jax.random.uniform(km, (B, T, C)) > 0.3).astype(jnp.float32)

    rev = RevONPallas(num_features=C)
    w_b = rev.affine_weight            # (C,) broadcasts over the last axis
    b_b = rev.affine_bias

    # norm (unmasked)
    y = rev(x, "norm")
    jax.block_until_ready(y)
    y_ref, mean_ref, std_ref = _ref_norm(x, w_b, b_b)
    assert jnp.allclose(y, y_ref, atol=1e-4, rtol=1e-4)
    assert jnp.allclose(rev.mean, mean_ref, atol=1e-5, rtol=1e-5)
    assert jnp.allclose(rev.stdev, std_ref, atol=1e-5, rtol=1e-5)

    # norm-fore (re-normalize using the stored statistics)
    yf = rev(x, "norm-fore")
    jax.block_until_ready(yf)
    assert jnp.allclose(yf, y_ref, atol=1e-4, rtol=1e-4)

    # denorm round-trip: denorm(norm(x)) ~= x
    xd = rev(y, "denorm")
    jax.block_until_ready(xd)
    xd_ref = _ref_denorm(y_ref, w_b, b_b, mean_ref, std_ref)
    assert jnp.allclose(xd, xd_ref, atol=1e-4, rtol=1e-4)
    assert jnp.allclose(xd, x, atol=1e-3, rtol=1e-3)

    # norm (masked)
    ym = rev(x, "norm", mask=mask)
    jax.block_until_ready(ym)
    ym_ref, meanm_ref, stdm_ref = _ref_norm_masked(x, mask, w_b, b_b)
    assert jnp.allclose(ym, ym_ref, atol=1e-4, rtol=1e-4)
    assert jnp.allclose(rev.mean, meanm_ref, atol=1e-5, rtol=1e-5)
    assert jnp.allclose(rev.stdev, stdm_ref, atol=1e-5, rtol=1e-5)

    print("KERNEL_OK")
</pallas_src>

<mosaic_0001>
module attributes {stable_mosaic.version = 11 : i64} {
  func.func @kernel(%arg0: i32, %arg1: memref<2x2x128xf32, #tpu.memory_space<vmem>>, %arg2: memref<2x128xf32, #tpu.memory_space<vmem>>, %arg3: memref<2x2x128xf32, #tpu.memory_space<vmem>>, %arg4: memref<2x2x32xf32, #tpu.memory_space<vmem>>) attributes {dimension_semantics = [#tpu.dimension_semantics<parallel>], iteration_bounds = array<i64: 1>, scalar_prefetch = 0 : i64, scratch_operands = 0 : i64, tpu.core_type = #tpu.core_type<tc>, window_params = [{transform_indices = @transform_0, window_bounds = array<i64: 2, 2, 128>}, {pipeline_mode = #tpu.pipeline_mode<synchronous>, transform_indices = @transform_1, window_bounds = array<i64: 2, 128>}, {transform_indices = @transform_2, window_bounds = array<i64: 2, 2, 128>}, {transform_indices = @transform_3, window_bounds = array<i64: 2, 2, 32>}]} {
    %c0 = arith.constant 0 : index
    %c0_0 = arith.constant 0 : index
    %c0_1 = arith.constant 0 : index
    %0 = vector.load %arg1[%c0, %c0_0, %c0_1] : memref<2x2x128xf32, #tpu.memory_space<vmem>>, vector<2x2x128xf32>
    %c0_2 = arith.constant 0 : index
    %c0_3 = arith.constant 0 : index
    %1 = vector.load %arg2[%c0_2, %c0_3] : memref<2x128xf32, #tpu.memory_space<vmem>>, vector<2x128xf32>
    %2 = vector.extract_strided_slice %1 {offsets = [0, 0], sizes = [1, 128], strides = [1, 1]} : vector<2x128xf32> to vector<1x128xf32>
    %3 = vector.shape_cast %2 : vector<1x128xf32> to vector<128xf32>
    %4 = vector.shape_cast %3 : vector<128xf32> to vector<1x1x128xf32>
    %5 = vector.extract_strided_slice %1 {offsets = [1, 0], sizes = [1, 128], strides = [1, 1]} : vector<2x128xf32> to vector<1x128xf32>
    %6 = vector.shape_cast %5 : vector<1x128xf32> to vector<128xf32>
    %7 = vector.shape_cast %6 : vector<128xf32> to vector<1x1x128xf32>
    %cst = arith.constant dense<0.000000e+00> : vector<2x128xf32>
    %8 = vector.multi_reduction <add>, %0, %cst [1] : vector<2x2x128xf32> to vector<2x128xf32>
    %c32_i32 = arith.constant 32 : i32
    %9 = tpu.dynamic_rotate %8 by %c32_i32 dim 1 : vector<2x128xf32>, i32 -> vector<2x128xf32>
    %10 = arith.addf %8, %9 : vector<2x128xf32>
    %c64_i32 = arith.constant 64 : i32
    %11 = tpu.dynamic_rotate %10 by %c64_i32 dim 1 : vector<2x128xf32>, i32 -> vector<2x128xf32>
    %12 = arith.addf %10, %11 : vector<2x128xf32>
    %cst_4 = arith.constant 1.250000e-01 : f32
    %13 = vector.broadcast %cst_4 : f32 to vector<2x128xf32>
    %14 = arith.mulf %12, %13 : vector<2x128xf32>
    %15 = vector.shape_cast %14 : vector<2x128xf32> to vector<2x1x128xf32>
    %16 = vector.broadcast %15 : vector<2x1x128xf32> to vector<2x2x128xf32>
    %17 = arith.subf %0, %16 : vector<2x2x128xf32>
    %18 = arith.mulf %17, %17 : vector<2x2x128xf32>
    %cst_5 = arith.constant dense<0.000000e+00> : vector<2x128xf32>
    %19 = vector.multi_reduction <add>, %18, %cst_5 [1] : vector<2x2x128xf32> to vector<2x128xf32>
    %c32_i32_6 = arith.constant 32 : i32
    %20 = tpu.dynamic_rotate %19 by %c32_i32_6 dim 1 : vector<2x128xf32>, i32 -> vector<2x128xf32>
    %21 = arith.addf %19, %20 : vector<2x128xf32>
    %c64_i32_7 = arith.constant 64 : i32
    %22 = tpu.dynamic_rotate %21 by %c64_i32_7 dim 1 : vector<2x128xf32>, i32 -> vector<2x128xf32>
    %23 = arith.addf %21, %22 : vector<2x128xf32>
    %cst_8 = arith.constant 1.250000e-01 : f32
    %24 = vector.broadcast %cst_8 : f32 to vector<2x128xf32>
    %25 = arith.mulf %23, %24 : vector<2x128xf32>
    %cst_9 = arith.constant 9.99999974E-6 : f32
    %26 = vector.broadcast %cst_9 : f32 to vector<2x128xf32>
    %27 = arith.addf %25, %26 : vector<2x128xf32>
    %28 = math.sqrt %27 : vector<2x128xf32>
    %cst_10 = arith.constant 9.99999974E-6 : f32
    %29 = vector.broadcast %cst_10 : f32 to vector<2x128xf32>
    %30 = arith.addf %25, %29 : vector<2x128xf32>
    %31 = math.rsqrt %30 : vector<2x128xf32>
    %32 = vector.shape_cast %31 : vector<2x128xf32> to vector<2x1x128xf32>
    %33 = vector.broadcast %4 : vector<1x1x128xf32> to vector<2x1x128xf32>
    %34 = arith.mulf %32, %33 : vector<2x1x128xf32>
    %35 = vector.broadcast %34 : vector<2x1x128xf32> to vector<2x2x128xf32>
    %36 = arith.mulf %17, %35 : vector<2x2x128xf32>
    %37 = vector.broadcast %7 : vector<1x1x128xf32> to vector<2x2x128xf32>
    %38 = arith.addf %36, %37 : vector<2x2x128xf32>
    %c0_11 = arith.constant 0 : index
    %c0_12 = arith.constant 0 : index
    %c0_13 = arith.constant 0 : index
    %39 = vector.load %arg3[%c0_11, %c0_12, %c0_13] : memref<2x2x128xf32, #tpu.memory_space<vmem>>, vector<2x2x128xf32>
    tpu.vector_store %arg3[%c0_11, %c0_12, %c0_13], %38 {strides = array<i32>} : memref<2x2x128xf32, #tpu.memory_space<vmem>>, vector<2x2x128xf32>,
    %40 = vector.extract_strided_slice %15 {offsets = [0, 0, 0], sizes = [2, 1, 32], strides = [1, 1, 1]} : vector<2x1x128xf32> to vector<2x1x32xf32>
    %c0_14 = arith.constant 0 : index
    %c0_15 = arith.constant 0 : index
    %c0_16 = arith.constant 0 : index
    %41 = vector.load %arg4[%c0_14, %c0_15, %c0_16] : memref<2x2x32xf32, #tpu.memory_space<vmem>>, vector<2x1x32xf32>
    tpu.vector_store %arg4[%c0_14, %c0_15, %c0_16], %40 {strides = array<i32>} : memref<2x2x32xf32, #tpu.memory_space<vmem>>, vector<2x1x32xf32>,
    %42 = vector.extract_strided_slice %28 {offsets = [0, 0], sizes = [2, 32], strides = [1, 1]} : vector<2x128xf32> to vector<2x32xf32>
    %43 = vector.shape_cast %42 : vector<2x32xf32> to vector<2x1x32xf32>
    %c0_17 = arith.constant 0 : index
    %c1 = arith.constant 1 : index
    %c0_18 = arith.constant 0 : index
    %44 = vector.load %arg4[%c0_17, %c1, %c0_18] : memref<2x2x32xf32, #tpu.memory_space<vmem>>, vector<2x1x32xf32>
    tpu.vector_store %arg4[%c0_17, %c1, %c0_18], %43 {strides = array<i32>} : memref<2x2x32xf32, #tpu.memory_space<vmem>>, vector<2x1x32xf32>,
    return
  }
  func.func @transform_0(%arg0: i32) -> (i32, i32, i32) {
    %c0_i32 = arith.constant 0 : i32
    %c0_i32_0 = arith.constant 0 : i32
    %c0_i32_1 = arith.constant 0 : i32
    return %arg0, %c0_i32, %c0_i32_0 : i32, i32, i32
  }
  func.func @transform_1(%arg0: i32) -> (i32, i32) {
    %c0_i32 = arith.constant 0 : i32
    %c0_i32_0 = arith.constant 0 : i32
    %c0_i32_1 = arith.constant 0 : i32
    return %c0_i32, %c0_i32_0 : i32, i32
  }
  func.func @transform_2(%arg0: i32) -> (i32, i32, i32) {
    %c0_i32 = arith.constant 0 : i32
    %c0_i32_0 = arith.constant 0 : i32
    %c0_i32_1 = arith.constant 0 : i32
    return %arg0, %c0_i32, %c0_i32_0 : i32, i32, i32
  }
  func.func @transform_3(%arg0: i32) -> (i32, i32, i32) {
    %c0_i32 = arith.constant 0 : i32
    %c0_i32_0 = arith.constant 0 : i32
    %c0_i32_1 = arith.constant 0 : i32
    return %arg0, %c0_i32, %c0_i32_0 : i32, i32, i32
  }
}

</mosaic_0001>

<bundles_post_ra>
// kernel: tpu_custom_call.1
= control target key start
LH: loop header
LB: loop body
LE: loop exit
PB: predicated region body
PF: predicated region fallthrough
CT: control target
= control target key end

     0   :  { %9 = vsyncpa [#allocation3], 0  ;;  %s427_s0 = inlined_call_operand.hbm [shape: f32[2,2,128], index: 0, kind: input, shape index: {}]   ;;  %s428_s1 = inlined_call_operand.hbm [shape: f32[2,128], index: 1, kind: input, shape index: {}]   ;;  %s429_s2 = inlined_call_operand.hbm [shape: f32[2,2,128], index: 2, kind: output, shape index: {0}]   ;;  %s430_s3 = inlined_call_operand.hbm [shape: f32[2,2,32], index: 3, kind: output, shape index: {1}]  }
   0x1   :  { %10 = vsyncpa [#allocation6], 0 }
   0x2   :  { %11 = vsyncpa [#allocation4], 0 }
   0x3   :  { %12 = vsyncpa [#allocation9], 0  ;;  %s17_s14 = sshll.u32 %s427_s0, 4  ;;  %s353_s15 = smov [#allocation2]   ;;  %s18_s14 = int_to_ptr.hbm [resolvable:$true] %s17_s14 }
   0x4   :  { %s19_s16 = sshll.u32 %s353_s15, 4  ;;  %s31_s19 = sshll.u32 %s428_s1, 4  ;;  %s20_s16 = int_to_ptr.vmem [resolvable:$true] %s19_s16  ;;  %s32_s19 = int_to_ptr.hbm [resolvable:$true] %s31_s19 }
   0x5   :  { %s354_s20 = smov 32   ;;  %s355_s21 = smov 2  }
   0x6   :  { %25 = dma.hbm_to_vmem [thread:$0]  %s18_s14, 64, %s20_s16, [#allocation3], %s354_s20, %s354_s20, %s355_s21  }
   0x7   :  { %s356_s22 = smov [#allocation5]  }
   0x8   :  { %s33_s23 = sshll.u32 %s356_s22, 4  ;;  %s34_s23 = int_to_ptr.vmem [resolvable:$true] %s33_s23 }
   0x9   :  { %36 = dma.hbm_to_vmem [thread:$0]  %s32_s19, 32, %s34_s23, [#allocation6]  }
   0xa   :  { %345 = dma.done.wait [#allocation3], 64  }
   0xb   :  { %346 = vsyncadd [#allocation3], 4294967232 }
   0xc   :  { %347 = dma.done.wait [#allocation6], 32  }
   0xd   :  { %348 = vsyncadd [#allocation6], 4294967264  ;;  %vm48_vm0 = vcmask 1041408   ;;  %v45_v0 = vld [vmem:[#allocation2] sm:$0x3]  ;;  %vm65_vm1 = vcmask 1041409  }
   0xe   :  { %v46_v1 = vld [vmem:[#allocation2 + $0x2] sm:$0x3]  ;;  %v49_v2 = vsel %vm48_vm0, %v45_v0, 0.0  ;;  %s357_s0 = smov 64   ;;  %vm195_vm2 = vcmask 253952   ;;  %s358_s1 = smov [#allocation8]  }
   0xf   :  { %v56_v3 = vsel %vm48_vm0, %v46_v1, 0.0  ;;  %v50_v4 = vrot.slane %v49_v2, 4  ;;  %s217_s24 = sshll.u32 %s358_s1, 4  ;;  %s219_s27 = sshll.u32 %s430_s3, 4  ;;  %s218_s24 = int_to_ptr.vmem [resolvable:$true] %s217_s24  ;;  %s220_s27 = int_to_ptr.hbm [resolvable:$true] %s219_s27 }
  0x10   :  { %v57_v5 = vrot.slane %v56_v3, 4  ;;  %s359_s28 = smov [#allocation7]   ;;  %s206_s4 = sshll.u32 %s429_s2, 4  ;;  %s207_s4 = int_to_ptr.hbm [resolvable:$true] %s206_s4 }
  0x11   :  { %v51_v6 = vadd.f32 %v50_v4, %v49_v2  ;;  %s204_s3 = sshll.u32 %s359_s28, 4  ;;  %s205_s3 = int_to_ptr.vmem [resolvable:$true] %s204_s3 }
  0x12   :  { %v58_v7 = vadd.f32 %v57_v5, %v56_v3 }
  0x13   :  { %v52_v8 = vrot.slane %v51_v6, 2 }
  0x14   :  { %v59_v9 = vrot.slane %v58_v7, 2 }
  0x15   :  { %v53_v10 = vadd.f32 %v52_v8, %v51_v6 }
  0x16   :  { %v60_v11 = vadd.f32 %v59_v9, %v58_v7  ;;  %v47_v9 = vld [vmem:[#allocation5] sm:$0x3] }
  0x17   :  { %v54_v12 = vrot.slane %v53_v10, 1 }
  0x18   :  { %v61_v13 = vrot.slane %v60_v11, 1 }
  0x19   :  { %v55_v14 = vadd.f32 %v54_v12, %v53_v10  ;;  %v190_v12 = vperm.slane %v47_v9, 1 }
  0x1a   :  { %v62_v15 = vadd.f32 %v61_v13, %v60_v11 }
  0x1c   :  { %v66_v16 = vsel %vm65_vm1, %v62_v15, %v55_v14 }
  0x1d   :  { %68 = vrot.lane.b32.xlu0 %v66_v16, %s354_s20 }
  0x8f   :  { %v69_v17 = vpop.permute.xlu0 %68 }
  0x90   :  { %v71_v18 = vrot.slane %v69_v17, 1  ;;  %v74_v20 = vadd.f32 %v69_v17, %v55_v14 }
  0x92   :  { %v75_v19 = vadd.f32 %v71_v18, %v62_v15 }
  0x94   :  { %v78_v21 = vrot.slane %v75_v19, 7 }
  0x96   :  { %v79_v22 = vsel %vm65_vm1, %v78_v21, %v74_v20 }
  0x97   :  { %81 = vrot.lane.b32.xlu0 %v79_v22, %s357_s0 }
 0x109   :  { %v82_v23 = vpop.permute.xlu0 %81 }
 0x10a   :  { %v84_v24 = vrot.slane %v82_v23, 1  ;;  %v87_v25 = vadd.f32 %v82_v23, %v74_v20 }
 0x10c   :  { %v88_v26 = vadd.f32 %v84_v24, %v75_v19  ;;  %v89_v27 = vmul.f32 0.125, %v87_v25 }
 0x10e   :  { %v90_v28 = vmul.f32 0.125, %v88_v26  ;;  %v91_v29 = vperm.slane %v89_v27, 0  ;;  %196 = vst.msk [vmem:[#allocation8] sm:$0x1] %vm195_vm2, %v89_v27 }
 0x110   :  { %v92_v30 = vperm.slane %v90_v28, 0  ;;  %v396_v31 = vsub.f32 %v45_v0, %v91_v29  ;;  %197 = vst.msk [vmem:[#allocation8 + $0x2] sm:$0x1] %vm195_vm2, %v90_v28 }
 0x112   :  { %v399_v32 = vsub.f32 %v46_v1, %v92_v30  ;;  %v95_v33 = vmul.f32 %v396_v31, %v396_v31 }
 0x114   :  { %v96_v34 = vmul.f32 %v399_v32, %v399_v32  ;;  %v97_v35 = vsel %vm48_vm0, %v95_v33, 0.0 }
 0x115   :  { %v98_v36 = vrot.slane %v97_v35, 4 }
 0x116   :  { %v104_v37 = vsel %vm48_vm0, %v96_v34, 0.0 }
 0x117   :  { %v99_v38 = vadd.f32 %v98_v36, %v97_v35  ;;  %v105_v39 = vrot.slane %v104_v37, 4 }
 0x119   :  { %v100_v40 = vrot.slane %v99_v38, 2  ;;  %v106_v41 = vadd.f32 %v105_v39, %v104_v37 }
 0x11b   :  { %v101_v42 = vadd.f32 %v100_v40, %v99_v38  ;;  %v107_v43 = vrot.slane %v106_v41, 2 }
 0x11d   :  { %v102_v44 = vrot.slane %v101_v42, 1  ;;  %v108_v45 = vadd.f32 %v107_v43, %v106_v41 }
 0x11f   :  { %v109_v46 = vrot.slane %v108_v45, 1  ;;  %v103_v47 = vadd.f32 %v102_v44, %v101_v42 }
 0x121   :  { %v110_v48 = vadd.f32 %v109_v46, %v108_v45 }
 0x123   :  { %v113_v49 = vsel %vm65_vm1, %v110_v48, %v103_v47 }
 0x124   :  { %115 = vrot.lane.b32.xlu1 %v113_v49, %s354_s20 }
 0x196   :  { %v116_v50 = vpop.permute.xlu1 %115 }
 0x197   :  { %v118_v51 = vrot.slane %v116_v50, 1  ;;  %v121_v53 = vadd.f32 %v116_v50, %v103_v47 }
 0x199   :  { %v122_v52 = vadd.f32 %v118_v51, %v110_v48 }
 0x19b   :  { %v125_v54 = vrot.slane %v122_v52, 7 }
 0x19d   :  { %v126_v55 = vsel %vm65_vm1, %v125_v54, %v121_v53 }
 0x19e   :  { %128 = vrot.lane.b32.xlu1 %v126_v55, %s357_s0 }
 0x210   :  { %v129_v56 = vpop.permute.xlu1 %128 }
 0x211   :  { %v131_v57 = vrot.slane %v129_v56, 1  ;;  %v134_v58 = vadd.f32 %v129_v56, %v121_v53 }
 0x213   :  { %v135_v59 = vadd.f32 %v131_v57, %v122_v52  ;;  %v136_v60 = vmul.f32 0.125, %v134_v58 }
 0x215   :  { %v137_v61 = vmul.f32 0.125, %v135_v59  ;;  %v138_v62 = vadd.f32 1e-05, %v136_v60 }
 0x217   :  { %v139_v63 = vadd.f32 1e-05, %v137_v61  ;;  %245 = vrsqrt.f32 %v138_v62  ;;  %vm170_vm4 = vweird.f32 %v138_v62  ;;  %vm147_vm9 = vcmp.eq.f32.partialorder %v138_v62, inf }
 0x218   :  { %vm149_vm10 = vcmp.eq.f32.partialorder %v138_v62, 0.0  ;;  %v150_v17 = vand.u32 2147483648, %v138_v62 }
 0x219   :  { %247 = vrsqrt.f32 %v139_v63  ;;  %vm180_vm7 = vweird.f32 %v139_v63  ;;  %vm159_vm11 = vcmp.eq.f32.partialorder %v139_v63, inf  ;;  %v162_v24 = vand.u32 2147483648, %v139_v63 }
 0x21a   :  { %vm161_vm12 = vcmp.eq.f32.partialorder %v139_v63, 0.0 }
 0x21d   :  { %v246_v0 = vpop.eup %245 }
 0x21e   :  { %v141_v1 = vmul.f32 %v246_v0, %v138_v62  ;;  %vm171_vm3 = vweird.f32 %v246_v0 }
 0x21f   :  { %v248_v2 = vpop.eup %247  ;;  %vm172_vm6 = vmor %vm170_vm4, %vm171_vm3 }
 0x220   :  { %v142_v3 = vmul.f32 %v246_v0, %v141_v1  ;;  %v153_v4 = vmul.f32 %v248_v2, %v139_v63  ;;  %vm181_vm5 = vweird.f32 %v248_v2 }
 0x221   :  { %vm182_vm8 = vmor %vm180_vm7, %vm181_vm5 }
 0x222   :  { %v143_v5 = vmul.f32 0.5, %v142_v3  ;;  %v154_v6 = vmul.f32 %v248_v2, %v153_v4 }
 0x224   :  { %v144_v7 = vsub.f32 1.5, %v143_v5  ;;  %v155_v8 = vmul.f32 0.5, %v154_v6 }
 0x226   :  { %v145_v10 = vmul.f32 %v246_v0, %v144_v7  ;;  %v156_v11 = vsub.f32 1.5, %v155_v8 }
 0x228   :  { %v146_v13 = vmul.f32 %v145_v10, %v138_v62  ;;  %v157_v14 = vmul.f32 %v248_v2, %v156_v11  ;;  %v173_v15 = vsel %vm172_vm6, %v246_v0, %v145_v10 }
 0x229   :  { %v184_v16 = vmul.f32 %v173_v15, %v47_v9 }
 0x22a   :  { %v158_v18 = vmul.f32 %v157_v14, %v139_v63  ;;  %v183_v19 = vsel %vm182_vm8, %v248_v2, %v157_v14  ;;  %v148_v20 = vsel %vm147_vm9, %v138_v62, %v146_v13 }
 0x22b   :  { %v185_v21 = vmul.f32 %v183_v19, %v47_v9  ;;  %v186_v22 = vperm.slane %v184_v16, 0  ;;  %v151_v23 = vsel %vm149_vm10, %v150_v17, %v148_v20 }
 0x22c   :  { %v160_v25 = vsel %vm159_vm11, %v139_v63, %v158_v18  ;;  %198 = vst.msk [vmem:[#allocation8 + $0x1] sm:$0x1] %vm195_vm2, %v151_v23 }
 0x22d   :  { %v187_v26 = vperm.slane %v185_v21, 0  ;;  %v188_v27 = vmul.f32 %v186_v22, %v396_v31  ;;  %v163_v28 = vsel %vm161_vm12, %v162_v24, %v160_v25 }
 0x22e   :  { %199 = vst.msk [vmem:[#allocation8 + $0x3] sm:$0x1] %vm195_vm2, %v163_v28 }
 0x22f   :  { %v189_v29 = vmul.f32 %v187_v26, %v399_v32  ;;  %v191_v30 = vadd.f32 %v190_v12, %v188_v27  ;;  %225 = dma.vmem_to_hbm [thread:$0]  %s218_s24, 64, %s220_s27, [#allocation9], %s354_s20, %s354_s20, %s355_s21  }
 0x231   :  { %v192_v33 = vadd.f32 %v190_v12, %v189_v29  ;;  %193 = vst [vmem:[#allocation7] sm:$0x3] %v191_v30 }
 0x233   :  { %194 = vst [vmem:[#allocation7 + $0x2] sm:$0x3] %v192_v33 }
 0x234   :  { %212 = dma.vmem_to_hbm [thread:$0]  %s205_s3, 64, %s207_s4, [#allocation4], %s354_s20, %s354_s20, %s355_s21  }
 0x235   :  { %349 = dma.done.wait [#allocation4], 64  }
 0x236   :  { %350 = vsyncadd [#allocation4], 4294967232 }
 0x237   :  { %351 = dma.done.wait [#allocation9], 64  }
 0x238   :  { %352 = vsyncadd [#allocation9], 4294967232 }
 0x239   :  { %234 = vsyncpa [#allocation3], 1 }
 0x23a   :  { %235 = vsyncpa [#allocation6], 1 }
 0x23b   :  { %236 = vsyncpa [#allocation4], 1 }
 0x23c   :  { %237 = vsyncpa [#allocation9], 1 }

</bundles_post_ra>
